<compile_context>
chip_gen: v7x
topology: tpu7x:2x2x1
jax: 0.10.0
libtpu: 0.0.40
codegen_flags: <defaults>
</compile_context>

<pallas_src>
import functools
import math

import jax
import jax.numpy as jnp
import numpy as np
from jax.experimental import pallas as pl
from jax.experimental.pallas import tpu as pltpu


def _round_up(x, m):
    return (x + m - 1) // m * m


def _patch_embed_kernel(p_ref, w_ref, prm_ref, o_ref, *,
                        use_norm: bool, eps: float, true_e: int):
    # p_ref:   [TM, K]      flattened-patch tile (K unpadded; Mosaic lane-pads in VMEM)
    # w_ref:   [K, Ep]      projection weight (E zero-padded to Ep)
    # prm_ref: [n, Ep]      row 0 = bias; rows 1,2 = LN gamma, beta (if use_norm)
    # o_ref:   [TM, Ep]     output tile
    acc = jnp.dot(p_ref[...], w_ref[...], preferred_element_type=jnp.float32)
    acc = acc + prm_ref[0:1, :]
    if use_norm:
        ep = acc.shape[-1]
        inv_e = 1.0 / float(true_e)
        # Padded E lanes of `acc` are exactly zero (zero weight cols + zero
        # bias), so the plain sum equals the sum over the true E lanes.
        mean = jnp.sum(acc, axis=-1, keepdims=True) * inv_e
        centered = acc - mean
        if ep != true_e:
            # Two-pass variance: padded lanes would contribute mean^2 each,
            # so mask them before squaring.
            lane = jax.lax.broadcasted_iota(jnp.int32, (1, ep), 1)
            centered = jnp.where(lane < true_e, centered, 0.0)
        var = jnp.sum(centered * centered, axis=-1, keepdims=True) * inv_e
        acc = centered * jax.lax.rsqrt(var + eps)
        acc = acc * prm_ref[1:2, :] + prm_ref[2:3, :]   # padded lanes -> 0
    o_ref[...] = acc.astype(o_ref.dtype)


def patch_embed_forward(x, conv_w, conv_b, ln_g=None, ln_b=None, *,
                        patch_size=4, use_norm=True, eps=1e-5,
                        compute_dtype=jnp.bfloat16, out_dtype=None,
                        channels_last=False, block_m=1024):
    """x: [B, C, H, W] (NCHW).  Returns [B, E, ceil(H/ps), ceil(W/ps)] (NCHW),
    or [B, Wh, Ww, E] when channels_last=True.

    compute_dtype: dtype of the patches/weight streams fed to the MXU
      (default bf16 — accumulation, bias and LayerNorm stay float32).
    out_dtype: output dtype (default: x.dtype, matching the PyTorch module).
    """
    ps = patch_size
    B, C, H, W = x.shape
    E = conv_w.shape[0]
    if out_dtype is None:
        out_dtype = x.dtype

    # Pad right / bottom so H, W are multiples of patch_size (same as F.pad).
    pad_w = (-W) % ps
    pad_h = (-H) % ps
    if pad_w or pad_h:
        x = jnp.pad(x, ((0, 0), (0, 0), (0, pad_h), (0, pad_w)))
    Hp, Wp = H + pad_h, W + pad_w
    Wh, Ww = Hp // ps, Wp // ps

    # im2col: non-overlapping patches flattened in (C, kh, kw) order (matches
    # nn.Conv2d weight flattening).  Reshapes are free splits; the transpose
    # is the only layout op and allow_input_fusion lets XLA try to fuse it
    # (plus the bf16 convert) into the kernel's input DMA.
    xp = x.reshape(B, C, Wh, ps, Ww, ps)
    xp = jnp.transpose(xp, (0, 2, 4, 1, 3, 5))
    patches = xp.reshape(B * Wh * Ww, C * ps * ps)
    M, K = patches.shape
    if compute_dtype is not None and patches.dtype != jnp.dtype(compute_dtype):
        patches = patches.astype(compute_dtype)

    # Lane-dense E (unmasked stores); K and M are NOT padded in HBM.
    Ep = _round_up(E, 128)

    # Conv weight [E, C, kh, kw] -> [K, E] -> [K, Ep] (zero-padded cols).
    w_flat = conv_w.reshape(E, K).T
    if Ep != E:
        w_flat = jnp.pad(w_flat, ((0, 0), (0, Ep - E)))
    if compute_dtype is not None:
        w_flat = w_flat.astype(compute_dtype)

    def _row(v):
        return jnp.pad(v.astype(jnp.float32).reshape(1, E), ((0, 0), (0, Ep - E)))

    rows = [_row(conv_b)]
    if use_norm:
        g = jnp.ones((E,), jnp.float32) if ln_g is None else ln_g
        b = jnp.zeros((E,), jnp.float32) if ln_b is None else ln_b
        rows += [_row(g), _row(b)]
    params = jnp.concatenate(rows, axis=0)            # [1 or 3, Ep] float32
    n_prm = params.shape[0]

    # Row-tile size: cap at block_m, but also at ceil(M/2) rounded to 8 so the
    # parallel grid has >= 2 steps (v7x dual TensorCore); ~0.35us extra on
    # single-core parts, negligible.
    TM = int(min(block_m, max(8, _round_up(pl.cdiv(M, 2), 8))))
    grid_m = pl.cdiv(M, TM)

    kernel = functools.partial(_patch_embed_kernel,
                               use_norm=use_norm, eps=eps, true_e=E)

    p_bytes = M * K * patches.dtype.itemsize
    w_bytes = K * Ep * w_flat.dtype.itemsize
    o_bytes = M * Ep * jnp.dtype(out_dtype).itemsize
    cost = pl.CostEstimate(flops=2 * M * K * E,
                           transcendentals=M if use_norm else 0,
                           bytes_accessed=p_bytes + w_bytes + n_prm * Ep * 4 + o_bytes)

    out_flat = pl.pallas_call(
        kernel,
        out_shape=jax.ShapeDtypeStruct((M, Ep), out_dtype),
        grid_spec=pltpu.PrefetchScalarGridSpec(
            num_scalar_prefetch=0,
            grid=(grid_m,),
            in_specs=[
                # patches: tiled over M; full (unpadded) K as the lane dim.
                pl.BlockSpec((TM, K), lambda i: (i, 0)),
                # weight / params: resident (constant block index -> Pallas
                # skips the re-DMA after the first grid step).
                pl.BlockSpec((K, Ep), lambda i: (0, 0)),
                pl.BlockSpec((n_prm, Ep), lambda i: (0, 0)),
            ],
            out_specs=pl.BlockSpec((TM, Ep), lambda i: (i, 0)),
        ),
        compiler_params=pltpu.CompilerParams(
            dimension_semantics=("parallel",),
            allow_input_fusion=[True, False, False],
        ),
        cost_estimate=cost,
    )(patches, w_flat, params)

    # Drop lane padding; reshape to token grid.
    out = out_flat[:, :E].reshape(B, Wh, Ww, E)
    if channels_last:
        return out
    # Matches the PyTorch module: ... .transpose(1,2).view(-1, E, Wh, Ww).
    return jnp.transpose(out, (0, 3, 1, 2))


def _reference_forward(x, conv_w, conv_b, ln_g, ln_b, *,
                       patch_size=4, use_norm=True, eps=1e-5):
    """Plain-JAX reference (conv_general_dilated) for correctness checking."""
    ps = patch_size
    B, C, H, W = x.shape
    pad_w = (-W) % ps
    pad_h = (-H) % ps
    if pad_w or pad_h:
        x = jnp.pad(x, ((0, 0), (0, 0), (0, pad_h), (0, pad_w)))
    y = jax.lax.conv_general_dilated(
        x, conv_w, window_strides=(ps, ps), padding="VALID",
        dimension_numbers=("NCHW", "OIHW", "NCHW"))
    y = y + conv_b[None, :, None, None]
    if use_norm:
        B2, E, Wh, Ww = y.shape
        t = y.reshape(B2, E, Wh * Ww).transpose(0, 2, 1)  # [B, N, E]
        mean = jnp.mean(t, axis=-1, keepdims=True)
        var = jnp.mean((t - mean) ** 2, axis=-1, keepdims=True)
        t = (t - mean) * jax.lax.rsqrt(var + eps)
        t = t * ln_g + ln_b
        y = t.transpose(0, 2, 1).reshape(B2, E, Wh, Ww)
    return y


if __name__ == "__main__":
    key = jax.random.PRNGKey(0)
    k_x, k_w, k_b, k_x2 = jax.random.split(key, 4)

    # Small shapes consistent with the module: patch_size=4, in_chans=4,
    # embed_dim=32, input [2, 4, 16, 16] (NCHW).
    B, C, H, W = 2, 4, 16, 16
    ps, E = 4, 32

    x = jax.random.normal(k_x, (B, C, H, W), dtype=jnp.float32)

    # Deterministic parameter init (mimics Conv2d default kaiming-uniform bound).
    fan_in = C * ps * ps
    bound = 1.0 / math.sqrt(fan_in)
    conv_w = jax.random.uniform(k_w, (E, C, ps, ps), jnp.float32, -bound, bound)
    conv_b = jax.random.uniform(k_b, (E,), jnp.float32, -bound, bound)
    ln_g = jnp.ones((E,), jnp.float32)   # LayerNorm default init
    ln_b = jnp.zeros((E,), jnp.float32)

    fwd_f32 = jax.jit(functools.partial(
        patch_embed_forward, patch_size=ps, use_norm=True,
        compute_dtype=jnp.float32))
    fwd_bf16 = jax.jit(functools.partial(
        patch_embed_forward, patch_size=ps, use_norm=True))   # default bf16 streams

    ref = _reference_forward(x, conv_w, conv_b, ln_g, ln_b,
                             patch_size=ps, use_norm=True)

    # Strict check: f32 compute path.
    out = jax.block_until_ready(fwd_f32(x, conv_w, conv_b, ln_g, ln_b))
    np.testing.assert_allclose(np.asarray(out), np.asarray(ref),
                               rtol=1e-4, atol=1e-4)
    assert out.shape == (B, E, H // ps, W // ps)

    # Default bf16-stream path: looser tolerance.
    out_bf = jax.block_until_ready(fwd_bf16(x, conv_w, conv_b, ln_g, ln_b))
    np.testing.assert_allclose(np.asarray(out_bf), np.asarray(ref),
                               rtol=5e-2, atol=7.5e-2)

    # Non-multiple-of-patch spatial dims: exercises the F.pad path AND the
    # ragged last M-block (M=40 with TM=24 -> partial block clamp).
    H2, W2 = 18, 14
    x2 = jax.random.normal(k_x2, (B, C, H2, W2), dtype=jnp.float32)
    ref2 = _reference_forward(x2, conv_w, conv_b, ln_g, ln_b,
                              patch_size=ps, use_norm=True)
    out2 = jax.block_until_ready(fwd_f32(x2, conv_w, conv_b, ln_g, ln_b))
    np.testing.assert_allclose(np.asarray(out2), np.asarray(ref2),
                               rtol=1e-4, atol=1e-4)
    assert out2.shape == (B, E, math.ceil(H2 / ps), math.ceil(W2 / ps))

    print("KERNEL_OK")
</pallas_src>

<mosaic_0001>
module attributes {stable_mosaic.version = 11 : i64} {
  func.func @_patch_embed_kernel(%arg0: i32, %arg1: memref<16x64xf32, #tpu.memory_space<vmem>>, %arg2: memref<64x128xf32, #tpu.memory_space<vmem>>, %arg3: memref<3x128xf32, #tpu.memory_space<vmem>>, %arg4: memref<16x128xf32, #tpu.memory_space<vmem>>) attributes {dimension_semantics = [#tpu.dimension_semantics<parallel>], iteration_bounds = array<i64: 2>, scalar_prefetch = 0 : i64, scratch_operands = 0 : i64, tpu.core_type = #tpu.core_type<tc>, window_params = [{transform_indices = @transform_0, window_bounds = array<i64: 16, 64>}, {pipeline_mode = #tpu.pipeline_mode<synchronous>, transform_indices = @transform_1, window_bounds = array<i64: 64, 128>}, {pipeline_mode = #tpu.pipeline_mode<synchronous>, transform_indices = @transform_2, window_bounds = array<i64: 3, 128>}, {transform_indices = @transform_3, window_bounds = array<i64: 16, 128>}]} {
    %c0 = arith.constant 0 : index
    %c0_0 = arith.constant 0 : index
    %0 = vector.load %arg1[%c0, %c0_0] : memref<16x64xf32, #tpu.memory_space<vmem>>, vector<16x64xf32>
    %c0_1 = arith.constant 0 : index
    %c0_2 = arith.constant 0 : index
    %1 = vector.load %arg2[%c0_1, %c0_2] : memref<64x128xf32, #tpu.memory_space<vmem>>, vector<64x128xf32>
    %cst = arith.constant dense<0.000000e+00> : vector<16x128xf32>
    %2 = tpu.matmul %0, %1, %cst {dimension_numbers = #tpu.dot_dimension_numbers<[1], [0], [0], [1], [0, 0, 1, 1], [], []>} : vector<16x64xf32>, vector<64x128xf32>, vector<16x128xf32> -> vector<16x128xf32>
    %c0_3 = arith.constant 0 : index
    %c0_4 = arith.constant 0 : index
    %3 = vector.load %arg3[%c0_3, %c0_4] : memref<3x128xf32, #tpu.memory_space<vmem>>, vector<1x128xf32>
    %4 = vector.broadcast %3 : vector<1x128xf32> to vector<16x128xf32>
    %5 = arith.addf %2, %4 : vector<16x128xf32>
    %cst_5 = arith.constant dense<0.000000e+00> : vector<16xf32>
    %6 = vector.multi_reduction <add>, %5, %cst_5 [1] : vector<16x128xf32> to vector<16xf32>
    %7 = vector.shape_cast %6 : vector<16xf32> to vector<16x1xf32>
    %cst_6 = arith.constant 3.125000e-02 : f32
    %8 = vector.broadcast %cst_6 : f32 to vector<16x1xf32>
    %9 = arith.mulf %7, %8 : vector<16x1xf32>
    %10 = vector.broadcast %9 : vector<16x1xf32> to vector<16x128xf32>
    %11 = arith.subf %5, %10 : vector<16x128xf32>
    %12 = tpu.iota {dimensions = array<i32: 1>} : vector<1x128xi32>
    %c32_i32 = arith.constant 32 : i32
    %13 = vector.broadcast %c32_i32 : i32 to vector<1x128xi32>
    %14 = arith.cmpi slt, %12, %13 : vector<1x128xi32>
    %cst_7 = arith.constant 0.000000e+00 : f32
    %15 = vector.shape_cast %14 : vector<1x128xi1> to vector<1x128xi1>
    %16 = vector.broadcast %15 : vector<1x128xi1> to vector<16x128xi1>
    %17 = vector.broadcast %cst_7 : f32 to vector<16x128xf32>
    %18 = arith.select %16, %11, %17 : vector<16x128xi1>, vector<16x128xf32>
    %19 = arith.mulf %18, %18 : vector<16x128xf32>
    %cst_8 = arith.constant dense<0.000000e+00> : vector<16xf32>
    %20 = vector.multi_reduction <add>, %19, %cst_8 [1] : vector<16x128xf32> to vector<16xf32>
    %21 = vector.shape_cast %20 : vector<16xf32> to vector<16x1xf32>
    %cst_9 = arith.constant 3.125000e-02 : f32
    %22 = vector.broadcast %cst_9 : f32 to vector<16x1xf32>
    %23 = arith.mulf %21, %22 : vector<16x1xf32>
    %cst_10 = arith.constant 9.99999974E-6 : f32
    %24 = vector.broadcast %cst_10 : f32 to vector<16x1xf32>
    %25 = arith.addf %23, %24 : vector<16x1xf32>
    %26 = math.rsqrt %25 : vector<16x1xf32>
    %27 = vector.broadcast %26 : vector<16x1xf32> to vector<16x128xf32>
    %28 = arith.mulf %18, %27 : vector<16x128xf32>
    %c1 = arith.constant 1 : index
    %c0_11 = arith.constant 0 : index
    %29 = vector.load %arg3[%c1, %c0_11] : memref<3x128xf32, #tpu.memory_space<vmem>>, vector<1x128xf32>
    %30 = vector.broadcast %29 : vector<1x128xf32> to vector<16x128xf32>
    %31 = arith.mulf %28, %30 : vector<16x128xf32>
    %c2 = arith.constant 2 : index
    %c0_12 = arith.constant 0 : index
    %32 = vector.load %arg3[%c2, %c0_12] : memref<3x128xf32, #tpu.memory_space<vmem>>, vector<1x128xf32>
    %33 = vector.broadcast %32 : vector<1x128xf32> to vector<16x128xf32>
    %34 = arith.addf %31, %33 : vector<16x128xf32>
    %c0_13 = arith.constant 0 : index
    %c0_14 = arith.constant 0 : index
    %35 = vector.load %arg4[%c0_13, %c0_14] : memref<16x128xf32, #tpu.memory_space<vmem>>, vector<16x128xf32>
    tpu.vector_store %arg4[%c0_13, %c0_14], %34 {strides = array<i32>} : memref<16x128xf32, #tpu.memory_space<vmem>>, vector<16x128xf32>,
    return
  }
  func.func @transform_0(%arg0: i32) -> (i32, i32) {
    %c0_i32 = arith.constant 0 : i32
    %c0_i32_0 = arith.constant 0 : i32
    return %arg0, %c0_i32 : i32, i32
  }
  func.func @transform_1(%arg0: i32) -> (i32, i32) {
    %c0_i32 = arith.constant 0 : i32
    %c0_i32_0 = arith.constant 0 : i32
    %c0_i32_1 = arith.constant 0 : i32
    return %c0_i32, %c0_i32_0 : i32, i32
  }
  func.func @transform_2(%arg0: i32) -> (i32, i32) {
    %c0_i32 = arith.constant 0 : i32
    %c0_i32_0 = arith.constant 0 : i32
    %c0_i32_1 = arith.constant 0 : i32
    return %c0_i32, %c0_i32_0 : i32, i32
  }
  func.func @transform_3(%arg0: i32) -> (i32, i32) {
    %c0_i32 = arith.constant 0 : i32
    %c0_i32_0 = arith.constant 0 : i32
    return %arg0, %c0_i32 : i32, i32
  }
}

</mosaic_0001>

<bundles_post_ra>
// kernel: patch_embed_forward.1
= control target key start
LH: loop header
LB: loop body
LE: loop exit
PB: predicated region body
PF: predicated region fallthrough
CT: control target
= control target key end

     0   :  { %8 = vsyncpa [#allocation3], 0  ;;  %s720_s0 = inlined_call_operand.vmem [shape: f32[32,64], index: 0, kind: input, shape index: {}]   ;;  %s721_s1 = inlined_call_operand.vmem [shape: f32[64,128], index: 1, kind: input, shape index: {}]   ;;  %s722_s2 = inlined_call_operand.vmem [shape: f32[3,128], index: 2, kind: input, shape index: {}]   ;;  %s723_s3 = inlined_call_operand.hbm [shape: f32[32,128], index: 3, kind: output, shape index: {}]  }
   0x1   :  { %10 = vsyncpa [#allocation3 + $0x1], 0  ;;  %s585_s12 = smov 0   ;;  %s587_s13 = smov 0  }
   0x2   :  { %s589_s14 = smov 0   ;;  %s591_s15 = smov 0  }
   0x3 LB: > { %s606_s16 = sadd.s32 4294967295, %s560_s15   ;;  %s390_s17 = sadd.s32 4294967294, %s560_s15   ;;  %s560_s15 = sphi %s591_s15, %s729_s15   ;;  %s556_s14 = sphi %s589_s14, %s728_s14   ;;  %s552_s13 = sphi %s587_s13, %s727_s13   ;;  %s548_s12 = sphi %s585_s12, %s726_s12  }
   0x4   : > { %s610_s18 = sadd.s32 1, %s560_s15   ;;  %s91_s19 = sadd.s32 1, %s556_s14 }
   0x5   : > { %s88_s20 = ssub.s32 %s560_s15, %s610_s18  ;;  %p101_p0 = scmp.ne.s32.totalorder %s556_s14, %s552_s13 }
   0x6   : > { %p89_p1 = scmp.eq.s32.totalorder %s88_s20, 0  ;;  %p102_p2 = scmp.eq.s32.totalorder %s606_s16, 1 }
   0x7   : > { %p107_p3 = scmp.ne.s32.totalorder %s552_s13, %s548_s12  ;;  %p108_p4 = scmp.eq.s32.totalorder %s390_s17, 1 }
   0x8   : > { %s621_s21 = scalar_select %p89_p1, %s556_s14, %s91_s19  }
   0x9   : > { %p623_p5 = por %p102_p2, %p101_p0  ;;  %p627_p6 = por %p108_p4, %p107_p3 }
   0xa   : > { %p393_p7 = scmp.ge.s32.totalorder %s560_s15, 1  ;;  %p141_p8 = scmp.lt.s32.totalorder %s560_s15, 3 }
   0xc   : > { %p142_p9 = pnand %p393_p7, %p141_p8 }
   0xd   : > { %v174_v0 = vld [vmem:[%s721_s1] sm:$0xff] (!%p142_p9)  ;;  %v175_v1 = vld [vmem:[%s721_s1 + $0x8] sm:$0xff] (!%p142_p9)  ;;  %v176_v2 = vld [vmem:[%s721_s1 + $0x10] sm:$0xff] (!%p142_p9)  ;;  %s395_s30 = sshll.u32 (!%p142_p9), %s606_s16, 1  ;;  %vm187_vm0 = vcmask (!%p142_p9), 523264   ;;  %v277_v19 = vlaneseq (!%p142_p9)  ;;  %s162_s29 = sand.u32 (!%p142_p9), 1, %s552_s13  }
   0xe   : > { %145 = sbr.rel (%p142_p9) target bundleno = 578 (0x242), region = 32  ;;  %v437_v3 = vpack.c.bf16 (!%p142_p9), %v175_v1, %v174_v0  ;;  %v177_v4 = vld [vmem:[%s721_s1 + $0x18] sm:$0xff] (!%p142_p9)  ;;  %p166_p10 = scmp.lt.s32.totalorder (!%p142_p9), %s395_s30, 3  ;;  %v178_v6 = vld [vmem:[%s721_s1 + $0x20] sm:$0xff] (!%p142_p9)  ;;  %v179_v7 = vld [vmem:[%s721_s1 + $0x28] sm:$0xff] (!%p142_p9) }
   0xf   : > { %v441_v5 = vpack.c.bf16 (!%p142_p9), %v177_v4, %v176_v2  ;;  %v445_v8 = vpack.c.bf16 (!%p142_p9), %v179_v7, %v178_v6  ;;  %v180_v9 = vld [vmem:[%s721_s1 + $0x30] sm:$0xff] (!%p142_p9)  ;;  %v181_v10 = vld [vmem:[%s721_s1 + $0x38] sm:$0xff] (!%p142_p9)  ;;  %v397_v14 = vld [vmem:[%s722_s2] ss:$0 sm:$0xff] (!%p142_p9)  ;;  %v278_v20 = vand.u32 (!%p142_p9), 127, %v277_v19  ;;  %s394_s5 = sshll.u32 (!%p142_p9), %s162_s29, 4 }
  0x10   : > { %438 = vmatprep.subr.bf16.mxu0 (!%p142_p9), %v437_v3  ;;  %v449_v12 = vpack.c.bf16 (!%p142_p9), %v181_v10, %v180_v9  ;;  %v400_v38 = vld [vmem:[%s722_s2 + $0x1] ss:$0 sm:$0xff] (!%p142_p9)  ;;  %v401_v40 = vld [vmem:[%s722_s2 + $0x2] ss:$0 sm:$0xff] (!%p142_p9)  ;;  %s407_s8 = sshll.u32 (!%p142_p9), %s606_s16, 8  ;;  %s164_s9 = scalar_lea.vmem (!%p142_p9), [#allocation2], %s394_s5 }
  0x11   : > { %440 = vmatpush3.bf16.msra.mxu0 (!%p142_p9), %v437_v3  ;;  %vm279_vm1 = vcmp.lt.s32.totalorder (!%p142_p9), %v278_v20, 32  ;;  %s675_s19 = scalar_lea.hbm (!%p142_p9), %s723_s3, %s407_s8  ;;  %s679_s20 = scalar_lea.sflag (!%p142_p9), [#allocation3], %s162_s29 }
  0x12   : > { %442 = vmatprep.subr.bf16.mxu0 (!%p142_p9), %v441_v5  ;;  %s562_s16 = smov (!%p142_p9), [#allocation2]  }
  0x13   : > { %s502_s25 = sshll.u32 (!%p142_p9), %s562_s16, 4  ;;  %s503_s25 = int_to_ptr.vmem [resolvable:$false] %s502_s25 }
  0x15   : > { %s731_s30 = smov (!%p166_p10, %s395_s30), 3  ;;  %444 = vmatpush3.bf16.msra.mxu0 %v441_v5 }
  0x16   : > { %s396_s10 = sshll.u32 %s731_s30, 3  ;;  %446 = vmatprep.subr.bf16.mxu0 %v445_v8 }
  0x17   : > { %s169_s26 = scalar_lea.vmem %s720_s0, %s396_s10  ;;  %s328_s10 = sshll.u32 %s164_s9, 4  ;;  %s677_s10 = int_to_ptr.vmem [resolvable:$true] %s328_s10 }
  0x18   : > { %v172_v11 = vld [vmem:[%s169_s26] sm:$0xff]  ;;  %v173_v13 = vld [vmem:[%s169_s26 + $0x8] sm:$0xff]  ;;  %s498_s24 = scalar_lea.vmem %s677_s10, 256  ;;  %s504_s26 = scalar_lea.vmem %s503_s25, 512 }
  0x19   : > { %434 = vmatprep.mubr.msk.f32.mxu0 %vm187_vm0, %v172_v11  ;;  %448 = vmatpush3.bf16.msra.mxu0 %v445_v8  ;;  %p499_p11 = scmp.ne.s32.totalorder %s677_s10, %s498_s24  ;;  %p505_p0 = scmp.lt.s32.totalorder %s677_s10, %s503_s25 }
  0x1a   : > { %450 = vmatprep.subr.bf16.mxu0 %v449_v12  ;;  %p506_p1 = scmp.lt.s32.totalorder %s504_s26, %s498_s24 }
  0x1b   : > { %p500_p12 = pnand %p499_p11, %p623_p5 }
  0x1c   : > { %p507_p2 = por %p506_p1, %p505_p0 }
  0x1d   : > { %452 = vmatpush3.bf16.msra.mxu0 %v449_v12  ;;  %p501_p13 = pneg %p500_p12 }
  0x1f   : > { %p508_p3 = pnand %p507_p2, %p501_p13 }
  0x20   : > { %435 = vmatmul.mubr.msk.f32.vlgmr.msra.gmra.mrb[0].mxu0 %vm187_vm0, %v173_v13 }
  0xf3   : > { %v436_v15 = vpop.f32.mrb[0].mxu0 }
  0xf4   : > { %v260_v16 = vpop.f32.mrb[1].mxu0  ;;  %v266_v18 = vadd.f32 %v436_v15, %v397_v14 }
  0xf5   : > { %v261_v17 = vadd.f32 %v397_v14, %v260_v16 }
  0xf7   : > { %269 = vadd.xlane.f32.xlu0 %v261_v17 }
  0xfb   : > { %271 = vadd.xlane.f32.xlu0 %v266_v18 }
 0x184   : > { %v270_v21 = vpop.xlane.xlu0 %269 }
 0x185   : > { %v273_v22 = vmul.f32 0.03125, %v270_v21 }
 0x187   : > { %v275_v23 = vsub.f32 %v261_v17, %v273_v22 }
 0x188   : > { %v272_v24 = vpop.xlane.xlu0 %271 }
 0x189   : > { %v274_v25 = vmul.f32 0.03125, %v272_v24  ;;  %v282_v26 = vsel %vm279_vm1, %v275_v23, 0.0 }
 0x18a   : > { %v284_v27 = vmul.f32 %v282_v26, %v282_v26 }
 0x18b   : > { %v276_v28 = vsub.f32 %v266_v18, %v274_v25 }
 0x18c   : > { %286 = vadd.xlane.f32.xlu1 %v284_v27 }
 0x18d   : > { %v283_v29 = vsel %vm279_vm1, %v276_v28, 0.0 }
 0x18e   : > { %v285_v30 = vmul.f32 %v283_v29, %v283_v29 }
 0x190   : > { %288 = vadd.xlane.f32.xlu1 %v285_v30 }
 0x219   : > { %v287_v31 = vpop.xlane.xlu1 %286 }
 0x21a   : > { %v290_v32 = vmul.f32 0.03125, %v287_v31 }
 0x21c   : > { %v292_v33 = vadd.f32 1e-05, %v290_v32 }
 0x21d   : > { %v289_v34 = vpop.xlane.xlu1 %288 }
 0x21e   : > { %494 = vrsqrt.f32 %v292_v33  ;;  %v291_v35 = vmul.f32 0.03125, %v289_v34 }
 0x220   : > { %v293_v36 = vadd.f32 1e-05, %v291_v35 }
 0x222   : > { %496 = vrsqrt.f32 %v293_v36 }
 0x228   : > { %v495_v37 = vpop.eup %494 }
 0x229   : > { %v296_v39 = vmul.f32 %v495_v37, %v282_v26 }
 0x22b   : > { %v303_v41 = vmul.f32 %v400_v38, %v296_v39 }
 0x22c   : > { %v497_v42 = vpop.eup %496 }
 0x22d   : > { %v297_v43 = vmul.f32 %v497_v42, %v283_v29  ;;  %v310_v44 = vadd.f32 %v401_v40, %v303_v41 }
 0x22f   : > { %v304_v45 = vmul.f32 %v400_v38, %v297_v43  ;;  %312 = vst [vmem:[%s164_s9] sm:$0xff] %v310_v44 }
 0x231   : > { %v311_v46 = vadd.f32 %v401_v40, %v304_v45 }
 0x233   : > { %313 = vst [vmem:[%s164_s9 + $0x8] sm:$0xff] %v311_v46 }
 0x234   : > { %511 = shalt.err (!%p508_p3)
}
 0x235   : > { %s512_s27 = scalar_lea.hbm %s675_s19, 256  ;;  %s516_s30 = scalar_lea.hbm %s723_s3, 512 }
 0x236   : > { %p513_p4 = scmp.ne.s32.totalorder %s675_s19, %s512_s27  ;;  %p517_p9 = scmp.lt.u32.totalorder %s675_s19, %s723_s3 }
 0x237   : > { %p518_p10 = scmp.lt.u32.totalorder %s516_s30, %s512_s27  ;;  %p520_p12 = scmp.lt.u32.totalorder %s512_s27, %s675_s19 }
 0x238   : > { %p514_p7 = pnand %p513_p4, %p623_p5 }
 0x239   : > { %p519_p11 = por %p518_p10, %p517_p9 }
 0x23a   : > { %p515_p8 = pneg %p514_p7 }
 0x23b   : > { %p521_p13 = por %p520_p12, %p519_p11 }
 0x23d   : > { %p522_p0 = pnand %p521_p13, %p515_p8 }
 0x23f   : > { %525 = shalt.err (!%p522_p0)
}
 0x240   : > { %s563_s6 = smov 128   ;;  %s564_s7 = smov 8  }
 0x241   : > { %453 = dma.vmem_to_hbm [thread:$0]  (%p623_p5), %s677_s10, 256, %s675_s19, %s679_s20, %s563_s6, %s563_s6, %s564_s7  }
 0x242 PF: > { %p459_p1 = scmp.ge.s32.totalorder %s560_s15, 2  ;;  %s343_s8 = sand.u32 1, %s548_s12  }
 0x243   : > { %s344_s9 = scalar_lea.sflag [#allocation3], %s343_s8 }
 0x244   : > { %p456_p2 = pnand %p459_p1, %p627_p6 }
 0x246   : > { %543 = dma.done.wait (!%p456_p2), %s344_s9, 256  }
 0x247   : > { %545 = vsyncadd (!%p456_p2), %s344_s9, 4294967040  ;;  %p13_p3 = scmp.ge.s32.totalorder %s610_s18, 4   ;;  %s726_s12 = smov %s552_s13 }
 0x248   : > { %s727_s13 = smov %s556_s14  ;;  %s728_s14 = smov %s621_s21 }
 0x249   : > { %s729_s15 = smov %s610_s18  ;;  %15 = sbr.rel (!%p13_p3) target bundleno = 3 (0x3), region = 67 }
 0x250   :  { %349 = vsyncpa [#allocation3], 1 }
 0x251   :  { %351 = vsyncpa [#allocation3 + $0x1], 1 }

</bundles_post_ra>
